<compile_context>
chip_gen: v7x
topology: tpu7x:2x2x1
jax: 0.10.0
libtpu: 0.0.40
codegen_flags: <defaults>
</compile_context>

<pallas_src>
import functools

import jax
import jax.numpy as jnp
from jax import lax
from jax.experimental import pallas as pl
from jax.experimental.pallas import tpu as pltpu


def _attention_kernel(x_ref, w_ref, b_ref, o_ref, *, seq_len, precision):
    # x_ref: (TB, Sp, Dp)  block of batch rows, full (padded) feature dim
    # w_ref: (Dp, TN)      pre-transposed weight tile (in_dim, out_chunk)
    # b_ref: (1, TN)       bias tile
    # o_ref: (TB, TN)      output tile
    TB, Sp, Dp = x_ref.shape
    TN = w_ref.shape[1]

    # Linear: one MXU matmul over all TB*Sp rows.  The reshape is layout
    # preserving because Sp is a sublane multiple and Dp a lane multiple.
    x_block = x_ref[...]
    xm = x_block.reshape(TB * Sp, Dp)
    logits = lax.dot_general(
        xm, w_ref[...],
        dimension_numbers=(((1,), (0,)), ((), ())),
        preferred_element_type=jnp.float32,
        precision=precision)                                   # (TB*Sp, TN)
    logits = (logits + b_ref[...].astype(jnp.float32)).reshape(TB, Sp, TN)

    # Exact masking of padded sequence rows (they get zero softmax weight).
    if Sp != seq_len:
        row = lax.broadcasted_iota(jnp.int32, (TB, Sp, TN), 1)
        logits = jnp.where(row < seq_len, logits, -1e30)

    # Softmax over the SEQUENCE axis (f32 VPU/EUP math).
    m = jnp.max(logits, axis=1, keepdims=True)                 # (TB, 1, TN)
    e = jnp.exp(logits - m)
    denom = jnp.sum(e, axis=1, keepdims=True)
    r = pl.reciprocal(denom, approx=True)                      # EUP slot (cheap)
    r = r * (2.0 - denom * r)                                  # 1 NR step -> ~f32 exact
    attn = e * r

    # Weighted sum over the sequence.  Output channel j pairs with feature j
    # of x.  The x block always holds the FULL padded feature dim (its feature
    # block index is pinned to 0), so a global element offset is correct here;
    # do NOT tile x's feature dim without revisiting this slice.
    if TN == Dp:
        x_tile = x_block.astype(jnp.float32)
    else:
        jn = pl.multiple_of(pl.program_id(1) * TN, TN)
        x_tile = x_ref[:, :, pl.ds(jn, TN)].astype(jnp.float32)   # (TB, Sp, TN)
    o_ref[...] = jnp.sum(attn * x_tile, axis=1).astype(o_ref.dtype)


def _vmem_capacity_bytes():
    try:
        return int(pltpu.get_tpu_info().vmem_capacity_bytes)
    except Exception:
        return 64 << 20   # conservative: valid limit on every TPU generation


def attention_layer(x, weight, bias, *, precision=lax.Precision.HIGHEST):
    """x: (B, S, D); weight: (D, D) PyTorch (out_dim, in_dim); bias: (D,) -> (B, D)."""
    B, S, D = x.shape
    out_dim, in_dim = weight.shape
    # The module's `attn * x` broadcast requires output_dim == input_dim == D.
    assert out_dim == D and in_dim == D, "AttentionLayer needs output_dim == input_dim == D"

    x_bytes = jnp.dtype(x.dtype).itemsize
    w_bytes = jnp.dtype(weight.dtype).itemsize
    b_bytes = jnp.dtype(bias.dtype).itemsize
    o_bytes = x_bytes

    # Lane-dense feature/output dim; sublane-aligned sequence dim.
    sub = 8 if x_bytes >= 4 else (16 if x_bytes == 2 else 32)
    Dp = pl.cdiv(D, 128) * 128
    Sp = pl.cdiv(S, sub) * sub

    # Per-generation VMEM budget (~112 MiB usable on v5e/v6e, ~48 MiB on v7x),
    # leaving headroom for compiler-internal scratch and temporaries.
    cap = _vmem_capacity_bytes()
    budget = min(cap - (16 << 20), (cap * 7) // 8)

    def block_bytes(tb, tn):   # Pallas double-buffers every BlockSpec operand
        return 2 * (tb * Sp * Dp * x_bytes + Dp * tn * w_bytes
                    + tn * b_bytes + tb * tn * o_bytes)

    def temp_bytes(tb, tn):    # in-kernel f32 temporaries (logits/e/attn/x_tile + slack)
        return 6 * tb * Sp * tn * 4

    # Output-channel tile: make the weight fully resident (TN = Dp -> constant
    # index_map, weight DMA'd exactly once) whenever it fits; otherwise the
    # largest 128-multiple divisor of Dp that fits with TB = 1.
    TN = 128
    for tn in [t for t in range(Dp, 0, -128) if Dp % t == 0]:
        if block_bytes(1, tn) + temp_bytes(1, tn) <= budget:
            TN = tn
            break

    # Batch block: grow into the VMEM budget (weight HBM re-streaming scales
    # with the number of batch blocks when it is not resident; per-step
    # overhead ~0.35us otherwise), capped at the whole batch.
    per_tb = 2 * (Sp * Dp * x_bytes + TN * o_bytes) + 6 * Sp * TN * 4
    fixed = 2 * (Dp * TN * w_bytes + TN * b_bytes)
    TB = int(max(1, min(B, (budget - fixed) // per_tb)))

    # Megacore split (v7x): only when the j axis cannot feed the second core
    # AND each half still gives the MXU >= 256 rows.  Never on tiny batches,
    # where it would just add serial grid steps on v5e/v6e.
    if Dp // TN < 2 and B > 1 and pl.cdiv(B, TB) < 2 and (pl.cdiv(B, 2) * Sp) >= 256:
        TB = pl.cdiv(B, 2)

    # Keep the output tile sublane-aligned when the batch is split into
    # multiple blocks (a single block always equals the full padded dim).
    n_blk = pl.cdiv(B, TB)
    if n_blk > 1:
        TB = pl.cdiv(pl.cdiv(B, n_blk), sub) * sub
    Bp = pl.cdiv(B, TB) * TB

    # Zero padding is exact for this layer: padded features/channels contribute
    # nothing, padded batch rows produce zeros (sliced off), padded sequence
    # rows are masked inside the kernel.
    xp = x
    if (Bp, Sp, Dp) != (B, S, D):
        xp = jnp.pad(x, ((0, Bp - B), (0, Sp - S), (0, Dp - D)))
    # One-time HBM-side transpose to (in_dim, out_dim): the kernel contracts
    # ((1,),(0,)), so no per-step XLU transpose of the weight tile is needed.
    wt = weight.T
    if Dp != D:
        wt = jnp.pad(wt, ((0, Dp - D), (0, Dp - D)))
    bp = (bias if Dp == D else jnp.pad(bias, ((0, Dp - D),))).reshape(1, Dp)

    est = block_bytes(TB, TN) + temp_bytes(TB, TN)
    vmem_limit = int(min(max(32 << 20, est + (8 << 20)), cap - (2 << 20)))

    grid = (Bp // TB, Dp // TN)
    kernel = functools.partial(_attention_kernel, seq_len=S, precision=precision)

    out = pl.pallas_call(
        kernel,
        out_shape=jax.ShapeDtypeStruct((Bp, Dp), x.dtype),
        grid_spec=pltpu.PrefetchScalarGridSpec(
            num_scalar_prefetch=0,
            grid=grid,
            in_specs=[
                # Full-feature x block; its index is independent of j, so the
                # DMA is skipped while j (the inner axis) sweeps weight tiles.
                pl.BlockSpec((TB, Sp, Dp), lambda i, j: (i, 0, 0)),
                # (in_dim, out_chunk) weight tile; constant (0, 0) when TN==Dp
                # -> fetched from HBM exactly once for the whole kernel.
                pl.BlockSpec((Dp, TN), lambda i, j: (0, j)),
                pl.BlockSpec((1, TN), lambda i, j: (0, j)),
            ],
            out_specs=pl.BlockSpec((TB, TN), lambda i, j: (i, j)),
        ),
        compiler_params=pltpu.CompilerParams(
            dimension_semantics=("parallel", "parallel"),
            vmem_limit_bytes=vmem_limit),
        cost_estimate=pl.CostEstimate(
            flops=int(2 * Bp * Sp * Dp * Dp),
            transcendentals=int(Bp * Sp * Dp),
            bytes_accessed=int(xp.size * x_bytes + wt.size * w_bytes
                               + bp.size * b_bytes + Bp * Dp * o_bytes)),
    )(xp, wt, bp)

    return out[:B, :D]


def attention_layer_ref(x, weight, bias, *, precision=lax.Precision.HIGHEST):
    # Pure-JAX reference mirroring the PyTorch forward.
    logits = jnp.einsum("bsd,od->bso", x, weight, precision=precision) + bias
    attn = jax.nn.softmax(logits, axis=1)
    return jnp.sum(attn * x, axis=1)


if __name__ == "__main__":
    B, S, D = 2, 8, 32  # batch, seq, hidden (input_dim == output_dim == D)
    key = jax.random.PRNGKey(0)
    kx, kw, kb = jax.random.split(key, 3)

    x = jax.random.normal(kx, (B, S, D), dtype=jnp.float32)
    # Deterministic "Linear" params (PyTorch shape convention: (out_dim, in_dim)).
    weight = jax.random.normal(kw, (D, D), dtype=jnp.float32) * 0.1
    bias = jax.random.normal(kb, (D,), dtype=jnp.float32) * 0.1

    out = attention_layer(x, weight, bias)
    out = jax.block_until_ready(out)

    ref = attention_layer_ref(x, weight, bias)
    assert out.shape == (B, D)
    # NR-refined reciprocal + HIGHEST-precision matmul on both sides keeps the
    # true error ~1e-5; the tolerance only leaves margin for MXU pass-count
    # differences across TPU generations.
    assert jnp.allclose(out, ref, atol=2e-3, rtol=2e-3), "mismatch vs reference"

    print("KERNEL_OK")
</pallas_src>

<mosaic_0001>
module attributes {stable_mosaic.version = 11 : i64} {
  func.func @_attention_kernel(%arg0: i32, %arg1: i32, %arg2: memref<2x8x128xf32, #tpu.memory_space<vmem>>, %arg3: memref<128x128xf32, #tpu.memory_space<vmem>>, %arg4: memref<1x128xf32, #tpu.memory_space<vmem>>, %arg5: memref<2x128xf32, #tpu.memory_space<vmem>>) attributes {dimension_semantics = [#tpu.dimension_semantics<parallel>, #tpu.dimension_semantics<parallel>], iteration_bounds = array<i64: 1, 1>, scalar_prefetch = 0 : i64, scratch_operands = 0 : i64, tpu.core_type = #tpu.core_type<tc>, window_params = [{transform_indices = @transform_0, window_bounds = array<i64: 2, 8, 128>}, {transform_indices = @transform_1, window_bounds = array<i64: 128, 128>}, {transform_indices = @transform_2, window_bounds = array<i64: 1, 128>}, {transform_indices = @transform_3, window_bounds = array<i64: 2, 128>}]} {
    %c0 = arith.constant 0 : index
    %c0_0 = arith.constant 0 : index
    %c0_1 = arith.constant 0 : index
    %0 = vector.load %arg2[%c0, %c0_0, %c0_1] : memref<2x8x128xf32, #tpu.memory_space<vmem>>, vector<2x8x128xf32>
    %1 = vector.shape_cast %0 : vector<2x8x128xf32> to vector<16x128xf32>
    %c0_2 = arith.constant 0 : index
    %c0_3 = arith.constant 0 : index
    %2 = vector.load %arg3[%c0_2, %c0_3] : memref<128x128xf32, #tpu.memory_space<vmem>>, vector<128x128xf32>
    %cst = arith.constant dense<0.000000e+00> : vector<16x128xf32>
    %3 = tpu.matmul %1, %2, %cst {dimension_numbers = #tpu.dot_dimension_numbers<[1], [0], [0], [1], [0, 0, 1, 1], [], []>, precision = #tpu.contract_precision<fp32>} : vector<16x128xf32>, vector<128x128xf32>, vector<16x128xf32> -> vector<16x128xf32>
    %c0_4 = arith.constant 0 : index
    %c0_5 = arith.constant 0 : index
    %4 = vector.load %arg4[%c0_4, %c0_5] : memref<1x128xf32, #tpu.memory_space<vmem>>, vector<1x128xf32>
    %5 = vector.broadcast %4 : vector<1x128xf32> to vector<16x128xf32>
    %6 = arith.addf %3, %5 : vector<16x128xf32>
    %7 = vector.shape_cast %6 : vector<16x128xf32> to vector<2x8x128xf32>
    %cst_6 = arith.constant dense<0xFF800000> : vector<2x128xf32>
    %8 = vector.multi_reduction <maximumf>, %7, %cst_6 [1] : vector<2x8x128xf32> to vector<2x128xf32>
    %9 = vector.shape_cast %8 : vector<2x128xf32> to vector<2x1x128xf32>
    %10 = vector.broadcast %9 : vector<2x1x128xf32> to vector<2x8x128xf32>
    %11 = arith.subf %7, %10 : vector<2x8x128xf32>
    %12 = math.exp %11 : vector<2x8x128xf32>
    %cst_7 = arith.constant dense<0.000000e+00> : vector<2x128xf32>
    %13 = vector.multi_reduction <add>, %12, %cst_7 [1] : vector<2x8x128xf32> to vector<2x128xf32>
    %14 = vector.shape_cast %13 : vector<2x128xf32> to vector<2x1x128xf32>
    %15 = tpu.reciprocal %14 {approx = true} : vector<2x1x128xf32> -> vector<2x1x128xf32>
    %16 = arith.mulf %14, %15 : vector<2x1x128xf32>
    %cst_8 = arith.constant 2.000000e+00 : f32
    %17 = vector.broadcast %cst_8 : f32 to vector<2x1x128xf32>
    %18 = arith.subf %17, %16 : vector<2x1x128xf32>
    %19 = arith.mulf %15, %18 : vector<2x1x128xf32>
    %20 = vector.broadcast %19 : vector<2x1x128xf32> to vector<2x8x128xf32>
    %21 = arith.mulf %12, %20 : vector<2x8x128xf32>
    %22 = arith.mulf %21, %0 : vector<2x8x128xf32>
    %cst_9 = arith.constant dense<0.000000e+00> : vector<2x128xf32>
    %23 = vector.multi_reduction <add>, %22, %cst_9 [1] : vector<2x8x128xf32> to vector<2x128xf32>
    %c0_10 = arith.constant 0 : index
    %c0_11 = arith.constant 0 : index
    %24 = vector.load %arg5[%c0_10, %c0_11] : memref<2x128xf32, #tpu.memory_space<vmem>>, vector<2x128xf32>
    tpu.vector_store %arg5[%c0_10, %c0_11], %23 {strides = array<i32>} : memref<2x128xf32, #tpu.memory_space<vmem>>, vector<2x128xf32>,
    return
  }
  func.func @transform_0(%arg0: i32, %arg1: i32) -> (i32, i32, i32) {
    %c0_i32 = arith.constant 0 : i32
    %c0_i32_0 = arith.constant 0 : i32
    %c0_i32_1 = arith.constant 0 : i32
    return %arg0, %c0_i32, %c0_i32_0 : i32, i32, i32
  }
  func.func @transform_1(%arg0: i32, %arg1: i32) -> (i32, i32) {
    %c0_i32 = arith.constant 0 : i32
    %c0_i32_0 = arith.constant 0 : i32
    return %c0_i32, %arg1 : i32, i32
  }
  func.func @transform_2(%arg0: i32, %arg1: i32) -> (i32, i32) {
    %c0_i32 = arith.constant 0 : i32
    %c0_i32_0 = arith.constant 0 : i32
    return %c0_i32, %arg1 : i32, i32
  }
  func.func @transform_3(%arg0: i32, %arg1: i32) -> (i32, i32) {
    %c0_i32 = arith.constant 0 : i32
    return %arg0, %arg1 : i32, i32
  }
}

</mosaic_0001>

<bundles_post_ra>
// kernel: tpu_custom_call.1
= control target key start
LH: loop header
LB: loop body
LE: loop exit
PB: predicated region body
PF: predicated region fallthrough
CT: control target
= control target key end

     0   :  { %8 = vsyncpa [#allocation3], 0  ;;  %s1776_s0 = inlined_call_operand.hbm [shape: f32[2,8,128], index: 0, kind: input, shape index: {}]   ;;  %s1777_s1 = inlined_call_operand.hbm [shape: f32[128,128], index: 1, kind: input, shape index: {}]   ;;  %s1778_s2 = inlined_call_operand.vmem [shape: f32[1,128], index: 2, kind: input, shape index: {}]   ;;  %s1779_s3 = inlined_call_operand.hbm [shape: f32[2,128], index: 3, kind: output, shape index: {}]  }
   0x1   :  { %9 = vsyncpa [#allocation6], 0 }
   0x2   :  { %10 = vsyncpa [#allocation4], 0  ;;  %s1436_s12 = smov [#allocation2]   ;;  %s1364_s16 = scalar_lea.hbm %s1776_s0, 256 }
   0x3   :  { %s16_s13 = sshll.u32 %s1436_s12, 4  ;;  %p1365_p0 = scmp.ne.s32.totalorder %s1776_s0, %s1364_s16  ;;  %s17_s13 = int_to_ptr.vmem [resolvable:$true] %s16_s13 }
   0x4   :  { %p1368_p1 = scmp.lt.u32.totalorder %s1364_s16, %s1776_s0 }
   0x6   :  { %p1370_p2 = pnand %p1368_p1, %p1365_p0 }
   0x8   :  { %1373 = shalt.err (!%p1370_p2)
}
   0x9   :  { %s1374_s21 = scalar_lea.vmem %s17_s13, 256  ;;  %p1379_p4 = scmp.lt.s32.totalorder %s17_s13, %s17_s13 }
   0xa   :  { %p1375_p3 = scmp.ne.s32.totalorder %s17_s13, %s1374_s21  ;;  %p1380_p5 = scmp.lt.s32.totalorder %s1374_s21, %s1374_s21 }
   0xc   :  { %p1381_p6 = por %p1380_p5, %p1379_p4 }
   0xe   :  { %p1382_p7 = pnand %p1381_p6, %p1375_p3 }
  0x10   :  { %1385 = shalt.err (!%p1382_p7)
}
  0x11   :  { %s1437_s22 = smov 128   ;;  %s1438_s23 = smov 8  }
  0x12   :  { %22 = dma.hbm_to_vmem [thread:$0]  %s1776_s0, 256, %s17_s13, [#allocation3], %s1437_s22, %s1437_s22, %s1438_s23  }
  0x13   :  { %s1439_s26 = smov [#allocation5]   ;;  %s1386_s30 = scalar_lea.hbm %s1777_s1, 2048 }
  0x14   :  { %s28_s27 = sshll.u32 %s1439_s26, 4  ;;  %p1387_p8 = scmp.ne.s32.totalorder %s1777_s1, %s1386_s30  ;;  %s29_s27 = int_to_ptr.vmem [resolvable:$true] %s28_s27 }
  0x15   :  { %p1390_p9 = scmp.lt.u32.totalorder %s1386_s30, %s1777_s1 }
  0x17   :  { %p1392_p10 = pnand %p1390_p9, %p1387_p8 }
  0x19   :  { %1395 = shalt.err (!%p1392_p10)
}
  0x1a   :  { %s1396_s8 = scalar_lea.vmem %s29_s27, 2048  ;;  %p1401_p12 = scmp.lt.s32.totalorder %s29_s27, %s29_s27 }
  0x1b   :  { %p1397_p11 = scmp.ne.s32.totalorder %s29_s27, %s1396_s8  ;;  %p1402_p13 = scmp.lt.s32.totalorder %s1396_s8, %s1396_s8 }
  0x1d   :  { %p1403_p0 = por %p1402_p13, %p1401_p12 }
  0x1f   :  { %p1404_p1 = pnand %p1403_p0, %p1397_p11 }
  0x21   :  { %1407 = shalt.err (!%p1404_p1)
}
  0x22   :  { %34 = dma.hbm_to_vmem [thread:$0]  %s1777_s1, 2048, %s29_s27, [#allocation6], %s1437_s22, %s1437_s22, %s1438_s23  }
  0x23   :  { %1430 = dma.done.wait [#allocation3], 256  }
  0x24   :  { %1431 = vsyncadd [#allocation3], 4294967040 }
  0x25   :  { %1432 = dma.done.wait [#allocation6], 2048  }
  0x26   :  { %1433 = vsyncadd [#allocation6], 4294965248  ;;  %v45_v0 = vld [vmem:[#allocation5] sm:$0xff]  ;;  %v46_v1 = vld [vmem:[#allocation5 + $0x8] sm:$0xff]  ;;  %vm808_vm0 = vcmask 1041409  }
  0x27   :  { %v47_v2 = vld [vmem:[#allocation5 + $0x10] sm:$0xff]  ;;  %v69_v3 = vand.u32 4294901760, %v45_v0  ;;  %v72_v4 = vand.u32 4294901760, %v46_v1  ;;  %v1485_v5 = vld [vmem:[#allocation5 + $0x18] sm:$0xff]  ;;  %v1487_v7 = vld [vmem:[#allocation5 + $0x20] sm:$0xff] }
  0x28   :  { %v75_v6 = vand.u32 4294901760, %v47_v2  ;;  %v1489_v8 = vld [vmem:[#allocation5 + $0x28] sm:$0xff]  ;;  %v78_v9 = vand.u32 4294901760, %v1485_v5  ;;  %v81_v11 = vand.u32 4294901760, %v1487_v7  ;;  %v1498_v14 = vld [vmem:[#allocation5 + $0x30] sm:$0xff]  ;;  %v1500_v15 = vld [vmem:[#allocation5 + $0x38] sm:$0xff] }
  0x29   :  { %v1492_v10 = vpack.c.bf16 %v72_v4, %v69_v3  ;;  %v84_v12 = vand.u32 4294901760, %v1489_v8  ;;  %v1504_v16 = vld [vmem:[#allocation2] sm:$0xff]  ;;  %v87_v19 = vand.u32 4294901760, %v1498_v14  ;;  %v90_v20 = vand.u32 4294901760, %v1500_v15  ;;  %v1521_v21 = vld [vmem:[#allocation5 + $0x40] sm:$0xff]  ;;  %v1523_v22 = vld [vmem:[#allocation5 + $0x48] sm:$0xff] }
  0x2a   :  { %v1496_v13 = vpack.c.bf16 %v78_v9, %v75_v6  ;;  %v1509_v17 = vand.u32 4294901760, %v1504_v16  ;;  %v93_v26 = vand.u32 4294901760, %v1521_v21  ;;  %v96_v27 = vand.u32 4294901760, %v1523_v22  ;;  %v1542_v28 = vld [vmem:[#allocation5 + $0x50] sm:$0xff]  ;;  %v1544_v29 = vld [vmem:[#allocation5 + $0x58] sm:$0xff]  ;;  %v1561_v36 = vld [vmem:[#allocation5 + $0x60] sm:$0xff] }
  0x2b   :  { %1148 = vmatprep.subr.bf16.mxu1 %v1492_v10  ;;  %1244 = vmatprep.subr.bf16.mxu0 %v1492_v10  ;;  %v1517_v18 = vpack.c.bf16 %v84_v12, %v81_v11  ;;  %v1538_v25 = vpack.c.bf16 %v90_v20, %v87_v19  ;;  %v99_v31 = vand.u32 4294901760, %v1542_v28  ;;  %v1550_v33 = vld [vmem:[#allocation2 + $0x8] sm:$0xff]  ;;  %v102_v35 = vand.u32 4294901760, %v1544_v29  ;;  %v1563_v37 = vld [vmem:[#allocation5 + $0x68] sm:$0xff]  ;;  %v1576_v43 = vld [vmem:[#allocation5 + $0x70] sm:$0xff] }
  0x2c   :  { %1150 = vmatpush3.bf16.msra.mxu1 %v1492_v10  ;;  %1246 = vmatpush3.bf16.msra.mxu0 %v1492_v10  ;;  %v1527_v23 = vsub.f32 %v1504_v16, %v1509_v17  ;;  %v1558_v34 = vpack.c.bf16 %v96_v27, %v93_v26  ;;  %v1565_v38 = vsub.f32 %v45_v0, %v69_v3  ;;  %v1570_v40 = vand.u32 4294901760, %v1550_v33  ;;  %v1578_v44 = vld [vmem:[#allocation5 + $0x78] sm:$0xff] }
  0x2d   :  { %1152 = vmatprep.subr.bf16.mxu1 %v1496_v13  ;;  %1248 = vmatprep.subr.bf16.mxu0 %v1496_v13  ;;  %v1567_v39 = vsub.f32 %v46_v1, %v72_v4  ;;  %v105_v41 = vand.u32 4294901760, %v1561_v36  ;;  %v108_v42 = vand.u32 4294901760, %v1563_v37  ;;  %v1580_v45 = vsub.f32 %v47_v2, %v75_v6 }
  0x2e   :  { %v151_v24 = vand.u32 4294901760, %v1527_v23  ;;  %v1588_v46 = vpack.c.bf16 %v102_v35, %v99_v31  ;;  %v172_v47 = vand.u32 4294901760, %v1565_v38  ;;  %v1593_v49 = vsub.f32 %v1485_v5, %v78_v9 }
  0x2f   :  { %v179_v48 = vand.u32 4294901760, %v1567_v39  ;;  %v111_v50 = vand.u32 4294901760, %v1576_v43  ;;  %v114_v51 = vand.u32 4294901760, %v1578_v44  ;;  %v1599_v52 = vsub.f32 %v1550_v33, %v1570_v40 }
  0x30   :  { %1154 = vmatpush3.bf16.msra.mxu1 %v1496_v13  ;;  %1250 = vmatpush3.bf16.msra.mxu0 %v1496_v13  ;;  %v152_v30 = vsub.f32 %v1527_v23, %v151_v24  ;;  %v1607_v53 = vpack.c.bf16 %v108_v42, %v105_v41  ;;  %v186_v54 = vand.u32 4294901760, %v1580_v45  ;;  %v1613_v55 = vsub.f32 %v1487_v7, %v81_v11 }
  0x31   :  { %1156 = vmatprep.subr.bf16.mxu1 %v1517_v18  ;;  %1252 = vmatprep.subr.bf16.mxu0 %v1517_v18  ;;  %v173_v56 = vsub.f32 %v1565_v38, %v172_v47  ;;  %v180_v57 = vsub.f32 %v1567_v39, %v179_v48  ;;  %v193_v58 = vand.u32 4294901760, %v1593_v49  ;;  %v1623_v59 = vsub.f32 %v1489_v8, %v84_v12 }
  0x32   :  { %1074 = vmatprep.mubr.f32.mxu0 %v151_v24  ;;  %v153_v32 = vand.u32 4294901760, %v152_v30  ;;  %v1629_v60 = vpack.c.bf16 %v114_v51, %v111_v50  ;;  %v161_v61 = vand.u32 4294901760, %v1599_v52  ;;  %v187_v62 = vsub.f32 %v1580_v45, %v186_v54 }
  0x33   :  { %v200_v63 = vand.u32 4294901760, %v1613_v55  ;;  %v1639_v0 = vsub.f32 %v1498_v14, %v87_v19  ;;  %v1644_v1 = vsub.f32 %v1500_v15, %v90_v20  ;;  %v174_v2 = vand.u32 4294901760, %v173_v56 }
  0x34   :  { %1158 = vmatpush3.bf16.msra.mxu1 %v1517_v18  ;;  %1254 = vmatpush3.bf16.msra.mxu0 %v1517_v18  ;;  %v181_v3 = vand.u32 4294901760, %v180_v57  ;;  %v194_v4 = vsub.f32 %v1593_v49, %v193_v58  ;;  %v207_v5 = vand.u32 4294901760, %v1623_v59  ;;  %v1275_v6 = vpack.c.bf16 %v179_v48, %v172_v47 }
  0x35   :  { %1160 = vmatprep.subr.bf16.mxu1 %v1538_v25  ;;  %1256 = vmatprep.subr.bf16.mxu0 %v1538_v25  ;;  %v162_v7 = vsub.f32 %v1599_v52, %v161_v61  ;;  %v1654_v8 = vsub.f32 %v1521_v21, %v93_v26  ;;  %v188_v9 = vand.u32 4294901760, %v187_v62  ;;  %v201_v11 = vsub.f32 %v1613_v55, %v200_v63 }
  0x36   :  { %969 = vmatprep.mubr.f32.mxu1 %v153_v32  ;;  %v214_v12 = vand.u32 4294901760, %v1639_v0  ;;  %v221_v14 = vand.u32 4294901760, %v1644_v1  ;;  %v1179_v15 = vpack.c.bf16 %v181_v3, %v174_v2  ;;  %v195_v19 = vand.u32 4294901760, %v194_v4 }
  0x37   :  { %v208_v20 = vsub.f32 %v1623_v59, %v207_v5  ;;  %v1667_v21 = vsub.f32 %v1523_v22, %v96_v27  ;;  %v163_v24 = vand.u32 4294901760, %v162_v7  ;;  %v1279_v26 = vpack.c.bf16 %v193_v58, %v186_v54 }
  0x38   :  { %1162 = vmatpush3.bf16.msra.mxu1 %v1538_v25  ;;  %1258 = vmatpush3.bf16.msra.mxu0 %v1538_v25  ;;  %v228_v30 = vand.u32 4294901760, %v1654_v8  ;;  %v1673_v32 = vsub.f32 %v1542_v28, %v99_v31  ;;  %v215_v47 = vsub.f32 %v1639_v0, %v214_v12  ;;  %v222_v48 = vsub.f32 %v1644_v1, %v221_v14 }
  0x39   :  { %1164 = vmatprep.subr.bf16.mxu1 %v1558_v34  ;;  %1260 = vmatprep.subr.bf16.mxu0 %v1558_v34  ;;  %v1682_v22 = vsub.f32 %v1544_v29, %v102_v35  ;;  %v1183_v27 = vpack.c.bf16 %v195_v19, %v188_v9  ;;  %v202_v54 = vand.u32 4294901760, %v201_v11  ;;  %v209_v56 = vand.u32 4294901760, %v208_v20 }
  0x3a   :  { %v235_v28 = vand.u32 4294901760, %v1667_v21  ;;  %v1283_v31 = vpack.c.bf16 %v207_v5, %v200_v63  ;;  %v229_v57 = vsub.f32 %v1654_v8, %v228_v30  ;;  %v1689_v58 = vsub.f32 %v1561_v36, %v105_v41 }
  0x3b   :  { %v216_v29 = vand.u32 4294901760, %v215_v47  ;;  %v223_v35 = vand.u32 4294901760, %v222_v48  ;;  %v242_v62 = vand.u32 4294901760, %v1673_v32  ;;  %v249_v2 = vand.u32 4294901760, %v1682_v22 }
  0x3c   :  { %1166 = vmatpush3.bf16.msra.mxu1 %v1558_v34  ;;  %1262 = vmatpush3.bf16.msra.mxu0 %v1558_v34  ;;  %v1187_v3 = vpack.c.bf16 %v209_v56, %v202_v54  ;;  %v1697_v63 = vsub.f32 %v1563_v37, %v108_v42  ;;  %v1287_v36 = vpack.c.bf16 %v221_v14, %v214_v12  ;;  %v230_v41 = vand.u32 4294901760, %v229_v57 }
  0x3d   :  { %1168 = vmatprep.subr.bf16.mxu1 %v1588_v46  ;;  %1264 = vmatprep.subr.bf16.mxu0 %v1588_v46  ;;  %v1191_v4 = vpack.c.bf16 %v223_v35, %v216_v29  ;;  %v243_v5 = vsub.f32 %v1673_v32, %v242_v62  ;;  %v256_v7 = vand.u32 4294901760, %v1689_v58  ;;  %v1708_v42 = vsub.f32 %v1576_v43, %v111_v50 }
  0x3e   :  { %v263_v37 = vand.u32 4294901760, %v1697_v63  ;;  %v1713_v11 = vsub.f32 %v1578_v44, %v114_v51  ;;  %v1291_v12 = vpack.c.bf16 %v235_v28, %v228_v30  ;;  %v1295_v51 = vpack.c.bf16 %v249_v2, %v242_v62 }
  0x3f   :  { %v244_v14 = vand.u32 4294901760, %v243_v5  ;;  %v257_v19 = vsub.f32 %v1689_v58, %v256_v7  ;;  %v270_v43 = vand.u32 4294901760, %v1708_v42  ;;  %v1211_v29 = vpack.c.bf16 %v1567_v39, %v1565_v38 }
  0x40   :  { %1170 = vmatpush3.bf16.msra.mxu1 %v1588_v46  ;;  %1266 = vmatpush3.bf16.msra.mxu0 %v1588_v46  ;;  %v277_v50 = vand.u32 4294901760, %v1713_v11  ;;  %v1299_v54 = vpack.c.bf16 %v263_v37, %v256_v7  ;;  %v1215_v35 = vpack.c.bf16 %v1593_v49, %v1580_v45  ;;  %v1219_v38 = vpack.c.bf16 %v1623_v59, %v1613_v55 }
  0x41   :  { %1172 = vmatprep.subr.bf16.mxu1 %v1607_v53  ;;  %1268 = vmatprep.subr.bf16.mxu0 %v1607_v53  ;;  %v271_v47 = vsub.f32 %v1708_v42, %v270_v43  ;;  %v1223_v39 = vpack.c.bf16 %v1644_v1, %v1639_v0 }
  0x42   :  { %v278_v48 = vsub.f32 %v1713_v11, %v277_v50  ;;  %v1303_v57 = vpack.c.bf16 %v277_v50, %v270_v43 }
  0x43   :  { %v272_v56 = vand.u32 4294901760, %v271_v47 }
  0x44   :  { %1174 = vmatpush3.bf16.msra.mxu1 %v1607_v53  ;;  %1270 = vmatpush3.bf16.msra.mxu0 %v1607_v53 }
  0x45   :  { %1176 = vmatprep.subr.bf16.mxu1 %v1629_v60  ;;  %1272 = vmatprep.subr.bf16.mxu0 %v1629_v60 }
  0x48   :  { %1178 = vmatpush3.bf16.msra.mxu1 %v1629_v60  ;;  %1274 = vmatpush3.bf16.msra.mxu0 %v1629_v60 }
  0x49   :  { %1180 = vmatprep.subr.bf16.mxu1 %v1179_v15  ;;  %1276 = vmatprep.subr.bf16.mxu0 %v1275_v6 }
  0x4b   :  { %970 = vmatmul.mubr.f32.vlgmr.msra.gmra.mrb[0].mxu1 %v163_v24  ;;  %1075 = vmatmul.mubr.f32.vlgmr.msra.gmra.mrb[0].mxu0 %v161_v61  ;;  %v236_v61 = vsub.f32 %v1667_v21, %v235_v28  ;;  %v264_v24 = vsub.f32 %v1697_v63, %v263_v37  ;;  %v279_v28 = vand.u32 4294901760, %v278_v48 }
  0x4c   :  { %1182 = vmatpush3.bf16.msra.mxu1 %v1179_v15  ;;  %1278 = vmatpush3.bf16.msra.mxu0 %v1275_v6  ;;  %v250_v6 = vsub.f32 %v1682_v22, %v249_v2 }
  0x4d   :  { %1184 = vmatprep.subr.bf16.mxu1 %v1183_v27  ;;  %1280 = vmatprep.subr.bf16.mxu0 %v1279_v26  ;;  %v237_v9 = vand.u32 4294901760, %v236_v61  ;;  %v265_v30 = vand.u32 4294901760, %v264_v24 }
  0x4e   :  { %1004 = vmatprep.mubr.f32.mxu1 %v1509_v17  ;;  %1109 = vmatprep.mubr.f32.mxu0 %v1509_v17  ;;  %v251_v15 = vand.u32 4294901760, %v250_v6 }
  0x4f   :  { %v1195_v20 = vpack.c.bf16 %v237_v9, %v230_v41 }
  0x50   :  { %1186 = vmatpush3.bf16.msra.mxu1 %v1183_v27  ;;  %1282 = vmatpush3.bf16.msra.mxu0 %v1279_v26  ;;  %v1199_v44 = vpack.c.bf16 %v251_v15, %v244_v14  ;;  %v258_v26 = vand.u32 4294901760, %v257_v19 }
  0x51   :  { %1188 = vmatprep.subr.bf16.mxu1 %v1187_v3  ;;  %1284 = vmatprep.subr.bf16.mxu0 %v1283_v31 }
  0x52   :  { %v1203_v27 = vpack.c.bf16 %v265_v30, %v258_v26 }
  0x54   :  { %1190 = vmatpush3.bf16.msra.mxu1 %v1187_v3  ;;  %1286 = vmatpush3.bf16.msra.mxu0 %v1283_v31  ;;  %v1207_v31 = vpack.c.bf16 %v279_v28, %v272_v56 }
  0x55   :  { %1192 = vmatprep.subr.bf16.mxu1 %v1191_v4  ;;  %1288 = vmatprep.subr.bf16.mxu0 %v1287_v36 }
  0x58   :  { %1194 = vmatpush3.bf16.msra.mxu1 %v1191_v4  ;;  %1290 = vmatpush3.bf16.msra.mxu0 %v1287_v36 }
  0x59   :  { %1196 = vmatprep.subr.bf16.mxu1 %v1195_v20  ;;  %1292 = vmatprep.subr.bf16.mxu0 %v1291_v12 }
  0x5c   :  { %1198 = vmatpush3.bf16.msra.mxu1 %v1195_v20  ;;  %1294 = vmatpush3.bf16.msra.mxu0 %v1291_v12 }
  0x5d   :  { %1200 = vmatprep.subr.bf16.mxu1 %v1199_v44  ;;  %1296 = vmatprep.subr.bf16.mxu0 %v1295_v51 }
  0x60   :  { %1202 = vmatpush3.bf16.msra.mxu1 %v1199_v44  ;;  %1298 = vmatpush3.bf16.msra.mxu0 %v1295_v51 }
  0x61   :  { %1204 = vmatprep.subr.bf16.mxu1 %v1203_v27  ;;  %1300 = vmatprep.subr.bf16.mxu0 %v1299_v54 }
  0x64   :  { %1206 = vmatpush3.bf16.msra.mxu1 %v1203_v27  ;;  %1302 = vmatpush3.bf16.msra.mxu0 %v1299_v54 }
  0x65   :  { %1208 = vmatprep.subr.bf16.mxu1 %v1207_v31  ;;  %1304 = vmatprep.subr.bf16.mxu0 %v1303_v57 }
  0x68   :  { %1210 = vmatpush3.bf16.msra.mxu1 %v1207_v31  ;;  %1306 = vmatpush3.bf16.msra.mxu0 %v1303_v57 }
  0x69   :  { %1212 = vmatprep.subr.bf16.mxu1 %v1211_v29  ;;  %1308 = vmatprep.subr.bf16.mxu0 %v1492_v10 }
  0x6b   :  { %1005 = vmatmul.mubr.f32.vlgmr.msra.gmra.mrb[0].mxu1 %v1570_v40  ;;  %1110 = vmatmul.mubr.f32.vlgmr.msra.gmra.mrb[0].mxu0 %v1570_v40 }
  0x6c   :  { %1214 = vmatpush3.bf16.msra.mxu1 %v1211_v29  ;;  %1310 = vmatpush3.bf16.msra.mxu0 %v1492_v10  ;;  %v1227_v10 = vpack.c.bf16 %v1667_v21, %v1654_v8 }
  0x6d   :  { %1216 = vmatprep.subr.bf16.mxu1 %v1215_v35  ;;  %1312 = vmatprep.subr.bf16.mxu0 %v1496_v13 }
  0x6e   :  { %1039 = vmatprep.mubr.f32.mxu1 %v1527_v23  ;;  %1144 = vmatprep.mubr.f32.mxu0 %v1509_v17  ;;  %v1235_v17 = vpack.c.bf16 %v1697_v63, %v1689_v58  ;;  %v828_v23 = vld [vmem:[%s1778_s2] ss:$0 sm:$0xff]  ;;  %s1440_s2 = smov [#allocation7]  }
  0x6f   :  { %s818_s11 = sshll.u32 %s1440_s2, 4  ;;  %s819_s11 = int_to_ptr.vmem [resolvable:$true] %s818_s11 }
  0x70   :  { %1218 = vmatpush3.bf16.msra.mxu1 %v1215_v35  ;;  %1314 = vmatpush3.bf16.msra.mxu0 %v1496_v13  ;;  %v1231_v13 = vpack.c.bf16 %v1682_v22, %v1673_v32  ;;  %s1408_s12 = scalar_lea.vmem %s819_s11, 32  ;;  %p1413_p3 = scmp.lt.s32.totalorder %s819_s11, %s819_s11 }
  0x71   :  { %1220 = vmatprep.subr.bf16.mxu1 %v1219_v38  ;;  %1316 = vmatprep.subr.bf16.mxu0 %v1517_v18  ;;  %p1409_p2 = scmp.ne.s32.totalorder %s819_s11, %s1408_s12  ;;  %p1414_p4 = scmp.lt.s32.totalorder %s1408_s12, %s1408_s12 }
  0x73   :  { %p1415_p5 = por %p1414_p4, %p1413_p3 }
  0x74   :  { %1222 = vmatpush3.bf16.msra.mxu1 %v1219_v38  ;;  %1318 = vmatpush3.bf16.msra.mxu0 %v1517_v18  ;;  %v1239_v18 = vpack.c.bf16 %v1713_v11, %v1708_v42 }
  0x75   :  { %1224 = vmatprep.subr.bf16.mxu1 %v1223_v39  ;;  %1320 = vmatprep.subr.bf16.mxu0 %v1538_v25  ;;  %p1416_p6 = pnand %p1415_p5, %p1409_p2 }
  0x78   :  { %1226 = vmatpush3.bf16.msra.mxu1 %v1223_v39  ;;  %1322 = vmatpush3.bf16.msra.mxu0 %v1538_v25 }
  0x79   :  { %1228 = vmatprep.subr.bf16.mxu1 %v1227_v10  ;;  %1324 = vmatprep.subr.bf16.mxu0 %v1558_v34 }
  0x7c   :  { %1230 = vmatpush3.bf16.msra.mxu1 %v1227_v10  ;;  %1326 = vmatpush3.bf16.msra.mxu0 %v1558_v34 }
  0x7d   :  { %1232 = vmatprep.subr.bf16.mxu1 %v1231_v13  ;;  %1328 = vmatprep.subr.bf16.mxu0 %v1588_v46 }
  0x80   :  { %1234 = vmatpush3.bf16.msra.mxu1 %v1231_v13  ;;  %1330 = vmatpush3.bf16.msra.mxu0 %v1588_v46 }
  0x81   :  { %1236 = vmatprep.subr.bf16.mxu1 %v1235_v17  ;;  %1332 = vmatprep.subr.bf16.mxu0 %v1607_v53 }
  0x84   :  { %1238 = vmatpush3.bf16.msra.mxu1 %v1235_v17  ;;  %1334 = vmatpush3.bf16.msra.mxu0 %v1607_v53 }
  0x85   :  { %1240 = vmatprep.subr.bf16.mxu1 %v1239_v18  ;;  %1336 = vmatprep.subr.bf16.mxu0 %v1629_v60 }
  0x88   :  { %1242 = vmatpush3.bf16.msra.mxu1 %v1239_v18  ;;  %1338 = vmatpush3.bf16.msra.mxu0 %v1629_v60 }
  0x8b   :  { %1040 = vmatmul.mubr.f32.vlgmr.msra.gmra.mrb[0].mxu1 %v1599_v52  ;;  %1145 = vmatmul.mubr.f32.vlgmr.msra.gmra.mrb[0].mxu0 %v1570_v40 }
 0x15e   :  { %v1041_v25 = vpop.f32.mrb[0].mxu1  ;;  %v1146_v34 = vpop.f32.mrb[0].mxu0 }
 0x15f   :  { %v1339_v45 = vadd.f32 %v1041_v25, %v828_v23  ;;  %v426_v46 = vpop.f32.mrb[1].mxu1  ;;  %v742_v49 = vpop.f32.mrb[1].mxu0 }
 0x160   :  { %v1341_v53 = vadd.f32 %v828_v23, %v426_v46 }
 0x161   :  { %v1340_v55 = vadd.f32 %v1339_v45, %v1146_v34 }
 0x162   :  { %v1342_v59 = vadd.f32 %v1341_v53, %v742_v49 }
 0x163   :  { %v758_v0 = vrot.slane %v1340_v55, 4 }
 0x164   :  { %v752_v1 = vrot.slane %v1342_v59, 4 }
 0x165   :  { %v759_v8 = vmax.f32 %v1340_v55, %v758_v0 }
 0x166   :  { %v753_v60 = vmax.f32 %v1342_v59, %v752_v1 }
 0x167   :  { %v760_v21 = vrot.slane %v759_v8, 2 }
 0x168   :  { %v754_v52 = vrot.slane %v753_v60, 2 }
 0x169   :  { %v761_v32 = vmax.f32 %v759_v8, %v760_v21 }
 0x16a   :  { %v755_v40 = vmax.f32 %v753_v60, %v754_v52 }
 0x16b   :  { %v762_v22 = vrot.slane %v761_v32, 1 }
 0x16c   :  { %v756_v58 = vrot.slane %v755_v40, 1 }
 0x16d   :  { %v763_v62 = vmax.f32 %v761_v32, %v762_v22 }
 0x16e   :  { %v757_v2 = vmax.f32 %v755_v40, %v756_v58 }
 0x16f   :  { %v765_v3 = vsub.f32 %v1340_v55, %v763_v62 }
 0x170   :  { %v764_v61 = vsub.f32 %v1342_v59, %v757_v2 }
 0x171   :  { %v768_v63 = vmul.f32 1.442695, %v765_v3 }
 0x172   :  { %v766_v36 = vmul.f32 1.442695, %v764_v61 }
 0x173   :  { %1356 = vpow2.f32 %v768_v63 }
 0x174   :  { %1358 = vpow2.f32 %v766_v36 }
 0x17d   :  { %v1357_v41 = vpop.eup %1356 }
 0x17e   :  { %v1359_v4 = vpop.eup %1358  ;;  %v776_v5 = vrot.slane %v1357_v41, 4 }
 0x17f   :  { %v770_v6 = vrot.slane %v1359_v4, 4 }
 0x180   :  { %v777_v7 = vadd.f32 %v1357_v41, %v776_v5 }
 0x181   :  { %v771_v9 = vadd.f32 %v1359_v4, %v770_v6 }
 0x182   :  { %v778_v37 = vrot.slane %v777_v7, 2 }
 0x183   :  { %v772_v42 = vrot.slane %v771_v9, 2 }
 0x184   :  { %v779_v11 = vadd.f32 %v778_v37, %v777_v7 }
 0x185   :  { %v773_v12 = vadd.f32 %v772_v42, %v771_v9 }
 0x186   :  { %v780_v14 = vrot.slane %v779_v11, 1 }
 0x187   :  { %v774_v15 = vrot.slane %v773_v12, 1 }
 0x188   :  { %v781_v19 = vadd.f32 %v780_v14, %v779_v11 }
 0x189   :  { %v775_v20 = vadd.f32 %v774_v15, %v773_v12 }
 0x18a   :  { %1360 = vrcp.f32 %v781_v19 }
 0x18b   :  { %1362 = vrcp.f32 %v775_v20 }
 0x194   :  { %v1361_v24 = vpop.eup %1360 }
 0x195   :  { %v1363_v43 = vpop.eup %1362  ;;  %v785_v50 = vmul.f32 %v1361_v24, %v781_v19 }
 0x196   :  { %v784_v44 = vmul.f32 %v1363_v43, %v775_v20 }
 0x197   :  { %v787_v51 = vsub.f32 2.0, %v785_v50 }
 0x198   :  { %v786_v26 = vsub.f32 2.0, %v784_v44 }
 0x199   :  { %v789_v30 = vmul.f32 %v1361_v24, %v787_v51 }
 0x19a   :  { %v788_v47 = vmul.f32 %v1363_v43, %v786_v26 }
 0x19b   :  { %v791_v48 = vmul.f32 %v1357_v41, %v789_v30 }
 0x19c   :  { %v790_v27 = vmul.f32 %v1359_v4, %v788_v47 }
 0x19d   :  { %v793_v54 = vmul.f32 %v791_v48, %v1550_v33 }
 0x19e   :  { %v792_v56 = vmul.f32 %v790_v27, %v1504_v16 }
 0x19f   :  { %v800_v28 = vrot.slane %v793_v54, 4 }
 0x1a0   :  { %v794_v31 = vrot.slane %v792_v56, 4 }
 0x1a1   :  { %v801_v57 = vadd.f32 %v800_v28, %v793_v54 }
 0x1a2   :  { %v795_v29 = vadd.f32 %v794_v31, %v792_v56 }
 0x1a3   :  { %v802_v35 = vrot.slane %v801_v57, 2 }
 0x1a4   :  { %v796_v38 = vrot.slane %v795_v29, 2 }
 0x1a5   :  { %v803_v39 = vadd.f32 %v802_v35, %v801_v57 }
 0x1a6   :  { %v797_v10 = vadd.f32 %v796_v38, %v795_v29 }
 0x1a7   :  { %v804_v13 = vrot.slane %v803_v39, 1 }
 0x1a8   :  { %v798_v17 = vrot.slane %v797_v10, 1 }
 0x1a9   :  { %v805_v18 = vadd.f32 %v804_v13, %v803_v39 }
 0x1aa   :  { %v799_v23 = vadd.f32 %v798_v17, %v797_v10 }
 0x1ac   :  { %v809_v25 = vsel %vm808_vm0, %v805_v18, %v799_v23 }
 0x1ad   :  { %811 = vst [vmem:[#allocation7] sm:$0x3] %v809_v25 }
 0x1ae   :  { %1419 = shalt.err (!%p1416_p6)
}
 0x1af   :  { %s1420_s15 = scalar_lea.hbm %s1779_s3, 32 }
 0x1b0   :  { %p1421_p7 = scmp.ne.s32.totalorder %s1779_s3, %s1420_s15  ;;  %p1424_p8 = scmp.lt.u32.totalorder %s1420_s15, %s1779_s3 }
 0x1b2   :  { %p1426_p9 = pnand %p1424_p8, %p1421_p7 }
 0x1b4   :  { %1429 = shalt.err (!%p1426_p9)
}
 0x1b5   :  { %821 = dma.vmem_to_hbm [thread:$0]  %s819_s11, 32, %s1779_s3, [#allocation4]  }
 0x1b6   :  { %1434 = dma.done.wait [#allocation4], 32  }
 0x1b7   :  { %1435 = vsyncadd [#allocation4], 4294967264 }
 0x1b8   :  { %825 = vsyncpa [#allocation3], 1 }
 0x1b9   :  { %826 = vsyncpa [#allocation6], 1 }
 0x1ba   :  { %827 = vsyncpa [#allocation4], 1 }

</bundles_post_ra>
